<compile_context>
chip_gen: v7x
topology: tpu7x:2x2x1
jax: 0.10.0
libtpu: 0.0.40
codegen_flags: <defaults>
</compile_context>

<pallas_src>
import jax
import jax.numpy as jnp
from jax.experimental import pallas as pl
from jax.experimental.pallas import tpu as pltpu

LANE = 128     # lane-padding target (last dim)
SUBLANE = 8    # sublane-padding target (batch dim)


def rnn_seq_kernel(x_ref, hid0_ref, w1x_ref, w1h_ref, b1_ref, w2_ref, b2_ref,
                   out_ref, hid_out_ref, carry_ref):
    """One RNN step per grid iteration; weights + hidden state stay VMEM-resident."""
    t = pl.program_id(0)

    # Initialize the VMEM-resident hidden-state carry on the first step.
    @pl.when(t == 0)
    def _():
        carry_ref[...] = hid0_ref[...]

    x = x_ref[...]              # (Bp, C+I)   this step's [category | input]
    hid = carry_ref[...]        # (Bp, LANE)  lanes [0:H) hold the hidden state

    # Fused i2h / i2o: lanes [0:H) = new hidden, lanes [H:H+O) = i2o output, rest 0.
    # (w1h has zero rows for lanes >= H, so non-hidden lanes of the carry are inert.)
    fused = (jnp.dot(x, w1x_ref[...], preferred_element_type=jnp.float32)
             + jnp.dot(hid, w1h_ref[...], preferred_element_type=jnp.float32)
             + b1_ref[...])

    # o2o(cat([hidden, output])) as one padded matmul (zero rows beyond H+O).
    # b2 is -inf in padded lanes so they drop out of the log-softmax below.
    out = jnp.dot(fused, w2_ref[...], preferred_element_type=jnp.float32) + b2_ref[...]

    # dropout(p=0.1): identity in eval mode.
    # TODO(synk): train-mode dropout would use pltpu.prng_seed + pltpu.prng_random_bits.

    # log_softmax along lanes (numerically stable; -inf padded lanes contribute 0).
    m = jnp.max(out, axis=1, keepdims=True)
    lse = jnp.log(jnp.sum(jnp.exp(out - m), axis=1, keepdims=True)) + m
    out_ref[...] = out - lse

    # Carry the fused activation: the next step's i2h/i2o only read lanes [0:H).
    carry_ref[...] = fused
    hid_out_ref[...] = fused


def rnn_forward_seq(category, inputs_seq, hidden0, packed):
    """Run the RNN cell over a whole sequence inside a single pallas_call.

    category:   (B, C)      conditioning vector (same every step, as in the tutorial)
    inputs_seq: (T, B, I)   per-step input vectors
    hidden0:    (B, H)      initial hidden state
    returns:    log_probs (T, B, O), final hidden (B, H)
    """
    w1x, w1h, b1 = packed["w1x"], packed["w1h"], packed["b1"]
    w2, b2 = packed["w2"], packed["b2"]
    H, O = packed["H"], packed["O"]

    T, B, I = inputs_seq.shape
    C = category.shape[1]
    CI = C + I
    Np = w2.shape[1]
    Bp = max(SUBLANE, ((B + SUBLANE - 1) // SUBLANE) * SUBLANE)

    # [category | input] for every step (outside the recurrence), batch-padded.
    cat_b = jnp.broadcast_to(category[None], (T, B, C))
    x_seq = jnp.concatenate([cat_b, inputs_seq], axis=2)                  # (T, B, CI)
    x_p = jnp.zeros((T, Bp, CI), jnp.float32).at[:, :B, :].set(x_seq)
    hid0_p = jnp.zeros((Bp, Np), jnp.float32).at[:B, :H].set(hidden0)

    const2 = lambda t: (0, 0)

    out_p, hid_p = pl.pallas_call(
        rnn_seq_kernel,
        grid=(T,),
        in_specs=[
            pl.BlockSpec((None, Bp, CI), lambda t: (t, 0, 0)),   # x_t (per step)
            pl.BlockSpec((Bp, Np), const2),                      # hidden0 (resident)
            pl.BlockSpec((CI, Np), const2),                      # w1x     (resident)
            pl.BlockSpec((Np, Np), const2),                      # w1h     (resident)
            pl.BlockSpec((1, Np), const2),                       # b1      (resident)
            pl.BlockSpec((Np, Np), const2),                      # w2      (resident)
            pl.BlockSpec((1, Np), const2),                       # b2      (resident)
        ],
        out_specs=[
            pl.BlockSpec((None, Bp, Np), lambda t: (t, 0, 0)),   # per-step log-probs
            pl.BlockSpec((Bp, Np), const2),                      # final hidden
        ],
        out_shape=(jax.ShapeDtypeStruct((T, Bp, Np), jnp.float32),
                   jax.ShapeDtypeStruct((Bp, Np), jnp.float32)),
        scratch_shapes=[pltpu.VMEM((Bp, Np), jnp.float32)],      # hidden-state carry
        compiler_params=pltpu.CompilerParams(
            dimension_semantics=("arbitrary",)),                 # time recurrence
    )(x_p, hid0_p, w1x, w1h, b1, w2, b2)

    return out_p[:, :B, :O], hid_p[:B, :H]


def rnn_forward(category, inputs, hidden, packed):
    """Single-step forward matching the PyTorch module exactly."""
    out_seq, hid = rnn_forward_seq(category, inputs[None], hidden, packed)
    return out_seq[0], hid


def init_params(key, n_categories, input_size, hidden_size, output_size):
    """PyTorch-style nn.Linear init U(-1/sqrt(fan_in), 1/sqrt(fan_in)); W stored (in, out)."""
    k = jax.random.split(key, 6)
    fan1 = n_categories + input_size + hidden_size
    fan2 = hidden_size + output_size
    b1 = 1.0 / jnp.sqrt(fan1)
    b2 = 1.0 / jnp.sqrt(fan2)
    w_i2h = jax.random.uniform(k[0], (fan1, hidden_size), jnp.float32, -b1, b1)
    b_i2h = jax.random.uniform(k[1], (1, hidden_size), jnp.float32, -b1, b1)
    w_i2o = jax.random.uniform(k[2], (fan1, output_size), jnp.float32, -b1, b1)
    b_i2o = jax.random.uniform(k[3], (1, output_size), jnp.float32, -b1, b1)
    w_o2o = jax.random.uniform(k[4], (fan2, output_size), jnp.float32, -b2, b2)
    b_o2o = jax.random.uniform(k[5], (1, output_size), jnp.float32, -b2, b2)
    return (w_i2h, b_i2h, w_i2o, b_i2o, w_o2o, b_o2o)


def pack_params(params, n_categories, input_size, hidden_size, output_size,
                lane_pad=LANE):
    """One-time fuse + lane-pad of the three Linear layers for the kernel."""
    (w_i2h, b_i2h, w_i2o, b_i2o, w_o2o, b_o2o) = params
    C, I, H, O = n_categories, input_size, hidden_size, output_size
    CI = C + I
    Np = lane_pad
    assert H + O <= Np

    # Layer 1 (i2h | i2o fused along output lanes), split along K into the
    # [category|input] slab and the hidden slab (the latter padded to Np rows
    # so it multiplies the VMEM-resident carry directly).
    w1x = jnp.zeros((CI, Np), jnp.float32)
    w1x = w1x.at[:, :H].set(w_i2h[:CI]).at[:, H:H + O].set(w_i2o[:CI])
    w1h = jnp.zeros((Np, Np), jnp.float32)
    w1h = w1h.at[:H, :H].set(w_i2h[CI:]).at[:H, H:H + O].set(w_i2o[CI:])
    b1 = jnp.zeros((1, Np), jnp.float32)
    b1 = b1.at[:, :H].set(b_i2h).at[:, H:H + O].set(b_i2o)

    # Layer 2 (o2o on cat([hidden, output])): rows [0:H) = hidden slab,
    # rows [H:H+O) = output slab, zero elsewhere.  Padded output lanes get a
    # -inf bias so the in-kernel log-softmax ignores them.
    w2 = jnp.zeros((Np, Np), jnp.float32)
    w2 = w2.at[:H, :O].set(w_o2o[:H]).at[H:H + O, :O].set(w_o2o[H:])
    b2 = jnp.full((1, Np), -jnp.inf, jnp.float32).at[:, :O].set(b_o2o)

    return {"w1x": w1x, "w1h": w1h, "b1": b1, "w2": w2, "b2": b2,
            "C": C, "I": I, "H": H, "O": O}


def rnn_step_ref(category, inputs, hidden, params):
    """Pure-JAX reference of one module forward step."""
    (w_i2h, b_i2h, w_i2o, b_i2o, w_o2o, b_o2o) = params
    x = jnp.concatenate([category, inputs, hidden], axis=1)
    h = x @ w_i2h + b_i2h
    o = x @ w_i2o + b_i2o
    out = jnp.concatenate([h, o], axis=1) @ w_o2o + b_o2o
    return jax.nn.log_softmax(out, axis=1), h


def rnn_seq_ref(category, inputs_seq, hidden, params):
    outs, h = [], hidden
    for t in range(inputs_seq.shape[0]):
        o, h = rnn_step_ref(category, inputs_seq[t], h, params)
        outs.append(o)
    return jnp.stack(outs, axis=0), h


if __name__ == "__main__":
    # small, deterministic shapes consistent with the module's forward
    B = 2              # batch
    n_categories = 8   # synthetic stand-in for len(all_categories)
    input_size = 16    # synthetic stand-in for n_letters
    hidden_size = 32
    output_size = 16
    T = 8              # sequence length (characters generated)

    key = jax.random.PRNGKey(0)
    k_param, k_cat, k_inp = jax.random.split(key, 3)

    params = init_params(k_param, n_categories, input_size, hidden_size, output_size)
    packed = pack_params(params, n_categories, input_size, hidden_size, output_size)

    # one-hot category / one-hot input letters (as in the tutorial), zero hidden state
    cat_idx = jax.random.randint(k_cat, (B,), 0, n_categories)
    inp_idx = jax.random.randint(k_inp, (T, B), 0, input_size)
    category = jax.nn.one_hot(cat_idx, n_categories, dtype=jnp.float32)     # (B, C)
    inputs_seq = jax.nn.one_hot(inp_idx, input_size, dtype=jnp.float32)     # (T, B, I)
    hidden0 = jnp.zeros((B, hidden_size), jnp.float32)

    # full-sequence kernel (time loop inside the kernel, weights VMEM-resident)
    out_seq, hid_final = rnn_forward_seq(category, inputs_seq, hidden0, packed)
    jax.block_until_ready((out_seq, hid_final))

    # check against a pure-JAX step-by-step reference
    out_ref_seq, hid_ref = rnn_seq_ref(category, inputs_seq, hidden0, params)
    assert out_seq.shape == (T, B, output_size)
    assert hid_final.shape == (B, hidden_size)
    assert bool(jnp.allclose(out_seq, out_ref_seq, atol=1e-4, rtol=1e-4))
    assert bool(jnp.allclose(hid_final, hid_ref, atol=1e-4, rtol=1e-4))

    # single-step wrapper matches the module's forward(category, input, hidden)
    out1, hid1 = rnn_forward(category, inputs_seq[0], hidden0, packed)
    out1_ref, hid1_ref = rnn_step_ref(category, inputs_seq[0], hidden0, params)
    assert bool(jnp.allclose(out1, out1_ref, atol=1e-4, rtol=1e-4))
    assert bool(jnp.allclose(hid1, hid1_ref, atol=1e-4, rtol=1e-4))

    print("KERNEL_OK")
</pallas_src>

<mosaic_0001>
module attributes {stable_mosaic.version = 11 : i64} {
  func.func @rnn_seq_kernel(%arg0: i32, %arg1: memref<1x8x24xf32, #tpu.memory_space<vmem>>, %arg2: memref<8x128xf32, #tpu.memory_space<vmem>>, %arg3: memref<24x128xf32, #tpu.memory_space<vmem>>, %arg4: memref<128x128xf32, #tpu.memory_space<vmem>>, %arg5: memref<1x128xf32, #tpu.memory_space<vmem>>, %arg6: memref<128x128xf32, #tpu.memory_space<vmem>>, %arg7: memref<1x128xf32, #tpu.memory_space<vmem>>, %arg8: memref<1x8x128xf32, #tpu.memory_space<vmem>>, %arg9: memref<8x128xf32, #tpu.memory_space<vmem>>, %arg10: memref<8x128xf32, #tpu.memory_space<vmem>>) attributes {dimension_semantics = [#tpu.dimension_semantics<arbitrary>], iteration_bounds = array<i64: 8>, scalar_prefetch = 0 : i64, scratch_operands = 1 : i64, tpu.core_type = #tpu.core_type<tc>, window_params = [{transform_indices = @transform_0, window_bounds = array<i64: 1, 8, 24>}, {pipeline_mode = #tpu.pipeline_mode<synchronous>, transform_indices = @transform_1, window_bounds = array<i64: 8, 128>}, {pipeline_mode = #tpu.pipeline_mode<synchronous>, transform_indices = @transform_2, window_bounds = array<i64: 24, 128>}, {pipeline_mode = #tpu.pipeline_mode<synchronous>, transform_indices = @transform_3, window_bounds = array<i64: 128, 128>}, {pipeline_mode = #tpu.pipeline_mode<synchronous>, transform_indices = @transform_4, window_bounds = array<i64: 1, 128>}, {pipeline_mode = #tpu.pipeline_mode<synchronous>, transform_indices = @transform_5, window_bounds = array<i64: 128, 128>}, {pipeline_mode = #tpu.pipeline_mode<synchronous>, transform_indices = @transform_6, window_bounds = array<i64: 1, 128>}, {transform_indices = @transform_7, window_bounds = array<i64: 1, 8, 128>}, {pipeline_mode = #tpu.pipeline_mode<synchronous>, transform_indices = @transform_8, window_bounds = array<i64: 8, 128>}]} {
    %c0_i32 = arith.constant 0 : i32
    %0 = arith.cmpi eq, %arg0, %c0_i32 : i32
    %1 = arith.extui %0 : i1 to i32
    %c0_i32_0 = arith.constant 0 : i32
    %2 = arith.cmpi ne, %1, %c0_i32_0 : i32
    scf.if %2 {
      %c0_26 = arith.constant 0 : index
      %c0_27 = arith.constant 0 : index
      %35 = vector.load %arg2[%c0_26, %c0_27] : memref<8x128xf32, #tpu.memory_space<vmem>>, vector<8x128xf32>
      %c0_28 = arith.constant 0 : index
      %c0_29 = arith.constant 0 : index
      %36 = vector.load %arg10[%c0_28, %c0_29] : memref<8x128xf32, #tpu.memory_space<vmem>>, vector<8x128xf32>
      tpu.vector_store %arg10[%c0_28, %c0_29], %35 {strides = array<i32>} : memref<8x128xf32, #tpu.memory_space<vmem>>, vector<8x128xf32>,
    } else {
    }
    %c0 = arith.constant 0 : index
    %c0_1 = arith.constant 0 : index
    %c0_2 = arith.constant 0 : index
    %3 = vector.load %arg1[%c0, %c0_1, %c0_2] : memref<1x8x24xf32, #tpu.memory_space<vmem>>, vector<1x8x24xf32>
    %4 = vector.shape_cast %3 : vector<1x8x24xf32> to vector<8x24xf32>
    %c0_3 = arith.constant 0 : index
    %c0_4 = arith.constant 0 : index
    %5 = vector.load %arg10[%c0_3, %c0_4] : memref<8x128xf32, #tpu.memory_space<vmem>>, vector<8x128xf32>
    %c0_5 = arith.constant 0 : index
    %c0_6 = arith.constant 0 : index
    %6 = vector.load %arg3[%c0_5, %c0_6] : memref<24x128xf32, #tpu.memory_space<vmem>>, vector<24x128xf32>
    %cst = arith.constant dense<0.000000e+00> : vector<8x128xf32>
    %7 = tpu.matmul %4, %6, %cst {dimension_numbers = #tpu.dot_dimension_numbers<[1], [0], [0], [1], [0, 0, 1, 1], [], []>} : vector<8x24xf32>, vector<24x128xf32>, vector<8x128xf32> -> vector<8x128xf32>
    %c0_7 = arith.constant 0 : index
    %c0_8 = arith.constant 0 : index
    %8 = vector.load %arg4[%c0_7, %c0_8] : memref<128x128xf32, #tpu.memory_space<vmem>>, vector<128x128xf32>
    %cst_9 = arith.constant dense<0.000000e+00> : vector<8x128xf32>
    %9 = tpu.matmul %5, %8, %cst_9 {dimension_numbers = #tpu.dot_dimension_numbers<[1], [0], [0], [1], [0, 0, 1, 1], [], []>} : vector<8x128xf32>, vector<128x128xf32>, vector<8x128xf32> -> vector<8x128xf32>
    %10 = arith.addf %7, %9 : vector<8x128xf32>
    %c0_10 = arith.constant 0 : index
    %c0_11 = arith.constant 0 : index
    %11 = vector.load %arg5[%c0_10, %c0_11] : memref<1x128xf32, #tpu.memory_space<vmem>>, vector<1x128xf32>
    %12 = vector.broadcast %11 : vector<1x128xf32> to vector<8x128xf32>
    %13 = arith.addf %10, %12 : vector<8x128xf32>
    %c0_12 = arith.constant 0 : index
    %c0_13 = arith.constant 0 : index
    %14 = vector.load %arg6[%c0_12, %c0_13] : memref<128x128xf32, #tpu.memory_space<vmem>>, vector<128x128xf32>
    %cst_14 = arith.constant dense<0.000000e+00> : vector<8x128xf32>
    %15 = tpu.matmul %13, %14, %cst_14 {dimension_numbers = #tpu.dot_dimension_numbers<[1], [0], [0], [1], [0, 0, 1, 1], [], []>} : vector<8x128xf32>, vector<128x128xf32>, vector<8x128xf32> -> vector<8x128xf32>
    %c0_15 = arith.constant 0 : index
    %c0_16 = arith.constant 0 : index
    %16 = vector.load %arg7[%c0_15, %c0_16] : memref<1x128xf32, #tpu.memory_space<vmem>>, vector<1x128xf32>
    %17 = vector.broadcast %16 : vector<1x128xf32> to vector<8x128xf32>
    %18 = arith.addf %15, %17 : vector<8x128xf32>
    %cst_17 = arith.constant dense<0xFF800000> : vector<8xf32>
    %19 = vector.multi_reduction <maximumf>, %18, %cst_17 [1] : vector<8x128xf32> to vector<8xf32>
    %20 = vector.shape_cast %19 : vector<8xf32> to vector<8x1xf32>
    %21 = vector.broadcast %20 : vector<8x1xf32> to vector<8x128xf32>
    %22 = arith.subf %18, %21 : vector<8x128xf32>
    %23 = math.exp %22 : vector<8x128xf32>
    %cst_18 = arith.constant dense<0.000000e+00> : vector<8xf32>
    %24 = vector.multi_reduction <add>, %23, %cst_18 [1] : vector<8x128xf32> to vector<8xf32>
    %25 = vector.shape_cast %24 : vector<8xf32> to vector<8x1xf32>
    %26 = math.log %25 : vector<8x1xf32>
    %27 = arith.addf %26, %20 : vector<8x1xf32>
    %28 = vector.broadcast %27 : vector<8x1xf32> to vector<8x128xf32>
    %29 = arith.subf %18, %28 : vector<8x128xf32>
    %c0_19 = arith.constant 0 : index
    %c0_20 = arith.constant 0 : index
    %c0_21 = arith.constant 0 : index
    %30 = vector.load %arg8[%c0_19, %c0_20, %c0_21] : memref<1x8x128xf32, #tpu.memory_space<vmem>>, vector<1x8x128xf32>
    %31 = vector.shape_cast %30 : vector<1x8x128xf32> to vector<8x128xf32>
    %32 = vector.shape_cast %29 : vector<8x128xf32> to vector<1x8x128xf32>
    tpu.vector_store %arg8[%c0_19, %c0_20, %c0_21], %32 {strides = array<i32>} : memref<1x8x128xf32, #tpu.memory_space<vmem>>, vector<1x8x128xf32>,
    %c0_22 = arith.constant 0 : index
    %c0_23 = arith.constant 0 : index
    %33 = vector.load %arg10[%c0_22, %c0_23] : memref<8x128xf32, #tpu.memory_space<vmem>>, vector<8x128xf32>
    tpu.vector_store %arg10[%c0_22, %c0_23], %13 {strides = array<i32>} : memref<8x128xf32, #tpu.memory_space<vmem>>, vector<8x128xf32>,
    %c0_24 = arith.constant 0 : index
    %c0_25 = arith.constant 0 : index
    %34 = vector.load %arg9[%c0_24, %c0_25] : memref<8x128xf32, #tpu.memory_space<vmem>>, vector<8x128xf32>
    tpu.vector_store %arg9[%c0_24, %c0_25], %13 {strides = array<i32>} : memref<8x128xf32, #tpu.memory_space<vmem>>, vector<8x128xf32>,
    return
  }
  func.func @transform_0(%arg0: i32) -> (i32, i32, i32) {
    %c0_i32 = arith.constant 0 : i32
    %c0_i32_0 = arith.constant 0 : i32
    %c0_i32_1 = arith.constant 0 : i32
    return %arg0, %c0_i32, %c0_i32_0 : i32, i32, i32
  }
  func.func @transform_1(%arg0: i32) -> (i32, i32) {
    %c0_i32 = arith.constant 0 : i32
    %c0_i32_0 = arith.constant 0 : i32
    %c0_i32_1 = arith.constant 0 : i32
    return %c0_i32, %c0_i32_0 : i32, i32
  }
  func.func @transform_2(%arg0: i32) -> (i32, i32) {
    %c0_i32 = arith.constant 0 : i32
    %c0_i32_0 = arith.constant 0 : i32
    %c0_i32_1 = arith.constant 0 : i32
    return %c0_i32, %c0_i32_0 : i32, i32
  }
  func.func @transform_3(%arg0: i32) -> (i32, i32) {
    %c0_i32 = arith.constant 0 : i32
    %c0_i32_0 = arith.constant 0 : i32
    %c0_i32_1 = arith.constant 0 : i32
    return %c0_i32, %c0_i32_0 : i32, i32
  }
  func.func @transform_4(%arg0: i32) -> (i32, i32) {
    %c0_i32 = arith.constant 0 : i32
    %c0_i32_0 = arith.constant 0 : i32
    %c0_i32_1 = arith.constant 0 : i32
    return %c0_i32, %c0_i32_0 : i32, i32
  }
  func.func @transform_5(%arg0: i32) -> (i32, i32) {
    %c0_i32 = arith.constant 0 : i32
    %c0_i32_0 = arith.constant 0 : i32
    %c0_i32_1 = arith.constant 0 : i32
    return %c0_i32, %c0_i32_0 : i32, i32
  }
  func.func @transform_6(%arg0: i32) -> (i32, i32) {
    %c0_i32 = arith.constant 0 : i32
    %c0_i32_0 = arith.constant 0 : i32
    %c0_i32_1 = arith.constant 0 : i32
    return %c0_i32, %c0_i32_0 : i32, i32
  }
  func.func @transform_7(%arg0: i32) -> (i32, i32, i32) {
    %c0_i32 = arith.constant 0 : i32
    %c0_i32_0 = arith.constant 0 : i32
    %c0_i32_1 = arith.constant 0 : i32
    return %arg0, %c0_i32, %c0_i32_0 : i32, i32, i32
  }
  func.func @transform_8(%arg0: i32) -> (i32, i32) {
    %c0_i32 = arith.constant 0 : i32
    %c0_i32_0 = arith.constant 0 : i32
    %c0_i32_1 = arith.constant 0 : i32
    return %c0_i32, %c0_i32_0 : i32, i32
  }
}

</mosaic_0001>

<bundles_post_ra>
// kernel: tpu_custom_call.1
= control target key start
LH: loop header
LB: loop body
LE: loop exit
PB: predicated region body
PF: predicated region fallthrough
CT: control target
= control target key end

     0   :  { %s1748_s0 = inlined_call_operand.hbm [shape: f32[8,8,24], index: 0, kind: input, shape index: {}]   ;;  %s1749_s1 = inlined_call_operand.hbm [shape: f32[8,128], index: 1, kind: input, shape index: {}]   ;;  %s1750_s2 = inlined_call_operand.hbm [shape: f32[24,128], index: 2, kind: input, shape index: {}]   ;;  %s1751_s3 = inlined_call_operand.hbm [shape: f32[128,128], index: 3, kind: input, shape index: {}]   ;;  %s1752_s4 = inlined_call_operand.vmem [shape: f32[1,128], index: 4, kind: input, shape index: {}]   ;;  %s1753_s5 = inlined_call_operand.hbm [shape: f32[128,128], index: 5, kind: input, shape index: {}]   ;;  %s1754_s6 = inlined_call_operand.vmem [shape: f32[1,128], index: 6, kind: input, shape index: {}]   ;;  %s1755_s7 = inlined_call_operand.hbm [shape: f32[8,8,128], index: 7, kind: output, shape index: {0}]   ;;  %s1756_s8 = inlined_call_operand.hbm [shape: f32[8,128], index: 8, kind: output, shape index: {1}]  }
   0x1   :  { %1761 = sst [smem:[#allocation20_spill]] %s1749_s1 }
   0x2   :  { %14 = vsyncpa [#allocation4], 0 }
   0x3   :  { %16 = vsyncpa [#allocation4 + $0x1], 0 }
   0x4   :  { %17 = vsyncpa [#allocation7], 0 }
   0x5   :  { %18 = vsyncpa [#allocation10], 0 }
   0x6   :  { %19 = vsyncpa [#allocation5], 0 }
   0x7   :  { %21 = vsyncpa [#allocation5 + $0x1], 0 }
   0x8   :  { %22 = vsyncpa [#allocation14], 0  ;;  %s1408_s27 = smov 0   ;;  %s1410_s28 = smov 0  }
   0x9   :  { %s1412_s29 = smov 0   ;;  %s1414_s30 = smov 0  }
   0xa LB: > { %s1351_s9 = smov [#allocation6]   ;;  %s1429_s11 = sadd.s32 4294967295, %s1349_s30   ;;  %s1349_s30 = sphi %s1414_s30, %s1788_s30   ;;  %s1345_s29 = sphi %s1412_s29, %s1787_s29   ;;  %s1341_s28 = sphi %s1410_s28, %s1786_s28   ;;  %s1337_s27 = sphi %s1408_s27, %s1785_s27  }
   0xb   : > { %s245_s10 = sshll.u32 %s1351_s9, 4  ;;  %p807_p0 = scmp.ge.s32.totalorder %s1349_s30, 1  ;;  %s246_s10 = int_to_ptr.vmem [resolvable:$true] %s245_s10 }
   0xc   : > { %p1757_p1 = scmp.eq.s32.totalorder %s1429_s11, 0  ;;  %p232_p2 = scmp.lt.s32.totalorder %s1349_s30, 9 }
   0xd   : > { %s1352_s13 = smov [#allocation9]   ;;  %s1353_s16 = smov [#allocation8]  }
   0xe   : > { %p1435_p4 = pnand %p807_p0, %p232_p2  ;;  %s268_s14 = sshll.u32 %s1352_s13, 4  ;;  %s1447_s14 = int_to_ptr.vmem [resolvable:$true] %s268_s14 }
   0xf   : > { %s255_s17 = sshll.u32 %s1353_s16, 4  ;;  %s1764_s1 = sld [smem:[#allocation20_spill]]  ;;  %s1449_s17 = int_to_ptr.vmem [resolvable:$true] %s255_s17 }
  0x10   : > { %s1762_s12 = scalar_select %p1435_p4, 1, 0 }
  0x11   : > { %p1024_p5 = pneg %p1435_p4 }
  0x13   : > { %p1443_p6 = pnand %p1024_p5, %p1757_p1 }
  0x15   : > { %s1103_s20 = scalar_lea.hbm %s1764_s1, 128  ;;  %p1459_p8 = pneg %p1443_p6 }
  0x16   : > { %p1104_p7 = scmp.ne.s32.totalorder %s1764_s1, %s1103_s20  ;;  %p1110_p11 = scmp.lt.u32.totalorder %s1103_s20, %s1764_s1 }
  0x18   : > { %p1106_p9 = pnand %p1459_p8, %p1104_p7 }
  0x1a   : > { %p1107_p10 = pneg %p1106_p9 }
  0x1c   : > { %p1112_p12 = pnand %p1110_p11, %p1107_p10 }
  0x1e   : > { %1115 = shalt.err (!%p1112_p12)
}
  0x1f   : > { %s1116_s26 = scalar_lea.vmem %s246_s10, 128  ;;  %p1124_p5 = scmp.lt.s32.totalorder %s246_s10, %s246_s10 }
  0x20   : > { %p1117_p13 = scmp.ne.s32.totalorder %s246_s10, %s1116_s26  ;;  %p1125_p3 = scmp.lt.s32.totalorder %s1116_s26, %s1116_s26 }
  0x22   : > { %p1119_p0 = pnand %p1117_p13, %p1459_p8  ;;  %p1126_p1 = por %p1125_p3, %p1124_p5 }
  0x24   : > { %p1120_p2 = pneg %p1119_p0 }
  0x26   : > { %p1127_p4 = pnand %p1126_p1, %p1120_p2 }
  0x28   : > { %1130 = shalt.err (!%p1127_p4)
}
  0x29   : > { %1027 = dma.hbm_to_vmem [thread:$0]  (!%p1443_p6), %s1764_s1, 128, %s246_s10, [#allocation7]  }
  0x2a   : > { %s1131_s19 = scalar_lea.hbm %s1751_s3, 2048 }
  0x2b   : > { %p1132_p7 = scmp.ne.s32.totalorder %s1751_s3, %s1131_s19  ;;  %p1138_p1 = scmp.lt.u32.totalorder %s1131_s19, %s1751_s3 }
  0x2d   : > { %p1134_p9 = pnand %p1132_p7, %p1459_p8 }
  0x2f   : > { %p1135_p3 = pneg %p1134_p9 }
  0x31   : > { %p1140_p4 = pnand %p1138_p1, %p1135_p3 }
  0x33   : > { %1143 = shalt.err (!%p1140_p4)
}
  0x34   : > { %s1144_s10 = scalar_lea.vmem %s1447_s14, 2048  ;;  %p1152_p13 = scmp.lt.s32.totalorder %s1447_s14, %s1447_s14 }
  0x35   : > { %p1145_p10 = scmp.ne.s32.totalorder %s1447_s14, %s1144_s10  ;;  %p1153_p0 = scmp.lt.s32.totalorder %s1144_s10, %s1144_s10 }
  0x37   : > { %p1147_p11 = pnand %p1145_p10, %p1459_p8  ;;  %p1154_p2 = por %p1153_p0, %p1152_p13 }
  0x39   : > { %p1148_p12 = pneg %p1147_p11 }
  0x3b   : > { %p1155_p5 = pnand %p1154_p2, %p1148_p12 }
  0x3d   : > { %1158 = shalt.err (!%p1155_p5)
}
  0x3e   : > { %s1354_s25 = smov 128   ;;  %s1355_s26 = smov 8  }
  0x3f   : > { %1033 = dma.hbm_to_vmem [thread:$0]  (!%p1443_p6), %s1751_s3, 2048, %s1447_s14, [#allocation10], %s1354_s25, %s1354_s25, %s1355_s26  }
  0x40   : > { %s1159_s19 = scalar_lea.hbm %s1750_s2, 384 }
  0x41   : > { %p1160_p7 = scmp.ne.s32.totalorder %s1750_s2, %s1159_s19  ;;  %p1166_p1 = scmp.lt.u32.totalorder %s1159_s19, %s1750_s2 }
  0x43   : > { %p1162_p9 = pnand %p1160_p7, %p1459_p8 }
  0x45   : > { %p1163_p3 = pneg %p1162_p9 }
  0x47   : > { %p1168_p4 = pnand %p1166_p1, %p1163_p3 }
  0x49   : > { %1171 = shalt.err (!%p1168_p4)
}
  0x4a   : > { %s1172_s14 = scalar_lea.vmem %s1449_s17, 384  ;;  %p1180_p13 = scmp.lt.s32.totalorder %s1449_s17, %s1449_s17 }
  0x4b   : > { %p1173_p10 = scmp.ne.s32.totalorder %s1449_s17, %s1172_s14  ;;  %p1181_p0 = scmp.lt.s32.totalorder %s1172_s14, %s1172_s14 }
  0x4d   : > { %p1175_p11 = pnand %p1173_p10, %p1459_p8  ;;  %p1182_p2 = por %p1181_p0, %p1180_p13 }
  0x4f   : > { %p1176_p12 = pneg %p1175_p11 }
  0x51   : > { %p1183_p5 = pnand %p1182_p2, %p1176_p12 }
  0x53   : > { %1186 = shalt.err (!%p1183_p5)
}
  0x54   : > { %1030 = dma.hbm_to_vmem [thread:$0]  (!%p1443_p6), %s1750_s2, 384, %s1449_s17, [#allocation7], %s1354_s25, %s1354_s25, %s1355_s26  }
  0x55   : > { %s1356_s13 = smov [#allocation11]   ;;  %s1187_s20 = scalar_lea.hbm %s1753_s5, 2048 }
  0x56   : > { %s284_s16 = sshll.u32 %s1356_s13, 4  ;;  %p1188_p7 = scmp.ne.s32.totalorder %s1753_s5, %s1187_s20  ;;  %s285_s16 = int_to_ptr.vmem [resolvable:$true] %s284_s16 }
  0x57   : > { %p1194_p1 = scmp.lt.u32.totalorder %s1187_s20, %s1753_s5 }
  0x58   : > { %p1190_p9 = pnand %p1188_p7, %p1459_p8 }
  0x5a   : > { %p1191_p3 = pneg %p1190_p9 }
  0x5c   : > { %p1196_p4 = pnand %p1194_p1, %p1191_p3 }
  0x5e   : > { %1199 = shalt.err (!%p1196_p4)
}
  0x5f   : > { %s1200_s17 = scalar_lea.vmem %s285_s16, 2048  ;;  %p1208_p13 = scmp.lt.s32.totalorder %s285_s16, %s285_s16 }
  0x60   : > { %p1201_p10 = scmp.ne.s32.totalorder %s285_s16, %s1200_s17  ;;  %p1209_p0 = scmp.lt.s32.totalorder %s1200_s17, %s1200_s17 }
  0x62   : > { %p1203_p11 = pnand %p1201_p10, %p1459_p8  ;;  %p1210_p2 = por %p1209_p0, %p1208_p13 }
  0x64   : > { %p1204_p12 = pneg %p1203_p11 }
  0x66   : > { %p1211_p5 = pnand %p1210_p2, %p1204_p12 }
  0x68   : > { %1214 = shalt.err (!%p1211_p5)
}
  0x69   : > { %1036 = dma.hbm_to_vmem [thread:$0]  (!%p1443_p6), %s1753_s5, 2048, %s285_s16, [#allocation10], %s1354_s25, %s1354_s25, %s1355_s26  }
  0x6a   : > { %s806_s15 = sadd.s32 4294967294, %s1349_s30   ;;  %s1550_s23 = sadd.s32 1, %s1349_s30  }
  0x6b   : > { %s32_s13 = ssub.s32 %s1349_s30, %s1550_s23  ;;  %s35_s18 = sadd.s32 1, %s1345_s29 }
  0x6c   : > { %p33_p8 = scmp.eq.s32.totalorder %s32_s13, 0  ;;  %p42_p7 = scmp.ne.s32.totalorder %s1345_s29, %s1341_s28 }
  0x6d   : > { %p43_p9 = scmp.eq.s32.totalorder %s1349_s30, 0  ;;  %p48_p3 = scmp.ne.s32.totalorder %s1341_s28, %s1337_s27 }
  0x6e   : > { %s1561_s19 = scalar_select %p33_p8, %s1345_s29, %s35_s18  }
  0x6f   : > { %p1563_p1 = por %p43_p9, %p42_p7  ;;  %p1767_p4 = scmp.eq.s32.totalorder %s1429_s11, 0 }
  0x70   : > { %p1759_p10 = scmp.eq.s32.totalorder %s1429_s11, 7  ;;  %p204_p11 = scmp.eq.s32.totalorder %s806_s15, 7 }
  0x71   : > { %p1569_p6 = por %p1767_p4, %p48_p3  ;;  %p1049_p12 = scmp.lt.s32.totalorder %s1349_s30, 8 }
  0x72   : > { %s301_s26 = sand.u32 1, %s1345_s29   ;;  %p1578_p13 = por %p1759_p10, %p42_p7 }
  0x73   : > { %p1582_p0 = por %p204_p11, %p48_p3  ;;  %s813_s22 = sshll.u32 %s301_s26, 3 }
  0x74   : > { %s1769_s16 = scalar_select %p1578_p13, 1, 0 }
  0x75   : > { %s1770_s21 = scalar_select %p1582_p0, 1, 0 }
  0x76   : > { %s814_s24 = sshll.u32 %s1349_s30, 7  ;;  %s305_s9 = scalar_lea.vmem [#allocation3], %s813_s22 }
  0x77   : > { %s1590_s10 = scalar_lea.hbm %s1748_s0, %s814_s24  ;;  %s312_s15 = sshll.u32 %s305_s9, 4  ;;  %s1592_s15 = int_to_ptr.vmem [resolvable:$true] %s312_s15 }
  0x78   : > { %p1596_p2 = pnand %p1049_p12, %p1563_p1  ;;  %s302_s18 = scalar_lea.sflag [#allocation4], %s301_s26 }
  0x79   : > { %s1215_s1 = scalar_lea.hbm %s1590_s10, 128  ;;  %s1220_s14 = scalar_lea.hbm %s1748_s0, 1024 }
  0x7a   : > { %p1216_p5 = scmp.ne.s32.totalorder %s1590_s10, %s1215_s1  ;;  %p1217_p8 = pneg %p1596_p2 }
  0x7b   : > { %p1221_p3 = scmp.lt.u32.totalorder %s1590_s10, %s1748_s0  ;;  %p1222_p1 = scmp.lt.u32.totalorder %s1220_s14, %s1215_s1 }
  0x7c   : > { %p1218_p7 = pnand %p1217_p8, %p1216_p5  ;;  %p1224_p11 = scmp.lt.u32.totalorder %s1215_s1, %s1590_s10 }
  0x7d   : > { %p1223_p4 = por %p1222_p1, %p1221_p3 }
  0x7e   : > { %p1219_p9 = pneg %p1218_p7 }
  0x7f   : > { %p1225_p12 = por %p1224_p11, %p1223_p4 }
  0x81   : > { %p1226_p10 = pnand %p1225_p12, %p1219_p9 }
  0x83   : > { %1229 = shalt.err (!%p1226_p10)
}
  0x84   : > { %s1230_s26 = scalar_lea.vmem %s1592_s15, 128  ;;  %s1357_s9 = smov [#allocation3]  }
  0x85   : > { %p1231_p5 = scmp.ne.s32.totalorder %s1592_s15, %s1230_s26  ;;  %s1235_s22 = sshll.u32 %s1357_s9, 4  ;;  %s1236_s22 = int_to_ptr.vmem [resolvable:$false] %s1235_s22 }
  0x86   : > { %s1237_s24 = scalar_lea.vmem %s1236_s22, 256  ;;  %p1238_p13 = scmp.lt.s32.totalorder %s1592_s15, %s1236_s22 }
  0x87   : > { %p1233_p7 = pnand %p1231_p5, %p1217_p8  ;;  %p1239_p3 = scmp.lt.s32.totalorder %s1237_s24, %s1230_s26 }
  0x89   : > { %p1234_p0 = pneg %p1233_p7  ;;  %p1240_p1 = por %p1239_p3, %p1238_p13 }
  0x8b   : > { %p1241_p4 = pnand %p1240_p1, %p1234_p0 }
  0x8d   : > { %1244 = shalt.err (!%p1241_p4)
}
  0x8e   : > { %1040 = dma.hbm_to_vmem [thread:$0]  (!%p1596_p2), %s1590_s10, 128, %s1592_s15, %s302_s18  }
  0x8f   : > { %p1772_p10 = scmp.ne.s32.totalorder %s1762_s12, 0 }
  0x90   : > { %s1628_s1 = sand.u32 (!%p1772_p10), 1, %s1341_s28  }
  0x91   : > { %321 = sbr.rel (%p1772_p10) target bundleno = 968 (0x3c8), region = 48  ;;  %s816_s14 = sshll.u32 (!%p1772_p10), %s1628_s1, 3 }
  0x92   : > { %s324_s20 = scalar_lea.sflag (!%p1772_p10), [#allocation4], %s1628_s1  ;;  %s1632_s17 = scalar_lea.vmem (!%p1772_p10), [#allocation3], %s816_s14 }
  0x98   : > { %1316 = dma.done.wait (%p1569_p6), %s324_s20, 128  }
  0x99   : > { %1318 = vsyncadd (%p1569_p6), %s324_s20, 4294967168  ;;  %p1773_p13 = scmp.eq.s32.totalorder %s1429_s11, 0 }
  0x9b   : > { %1320 = dma.done.wait (%p1773_p13), [#allocation7], 512   ;;  %p1774_p0 = pmov %p1773_p13 }
  0x9d   : > { %1322 = vsyncadd (%p1774_p0), [#allocation7], 4294966784  ;;  %p1775_p2 = pmov %p1774_p0 }
  0x9e   : > { %p1776_p8 = pmov %p1774_p0 }
  0x9f   : > { %1324 = dma.done.wait (%p1775_p2), [#allocation10], 4096  }
  0xa0   : > { %1326 = vsyncadd (%p1776_p8), [#allocation10], 4294963200  ;;  %s1646_s12 = scalar_lea.vmem [#allocation12], %s816_s14  ;;  %p1777_p9 = scmp.ne.s32.totalorder %s1429_s11, 0 }
  0xa1   : > { %v380_v0 = vld [vmem:[#allocation6] sm:$0xff] (!%p1777_p9) }
  0xa2   : > { %379 = sbr.rel (%p1777_p9) target bundleno = 169 (0xa9), region = 72  ;;  %381 = vst [vmem:[#allocation2] sm:$0xff] (!%p1777_p9), %v380_v0 }
  0xa9 PF: > { %v387_v1 = vld [vmem:[#allocation9] sm:$0xff]  ;;  %v388_v2 = vld [vmem:[#allocation9 + $0x8] sm:$0xff]  ;;  %v389_v3 = vld [vmem:[#allocation9 + $0x10] sm:$0xff]  ;;  %v1358_v4 = vmov 0.0|0.0   ;;  %vm1359_vm0 = vmmov 0   ;;  %v1360_v7 = vmov 0.0  }
  0xaa   : > { %949 = vmatprep.subr.bf16.mxu0 %v1358_v4  ;;  %v950_v5 = vpack.c.bf16 %v388_v2, %v387_v1  ;;  %v390_v6 = vld [vmem:[#allocation9 + $0x18] sm:$0xff]  ;;  %973 = vmatprep.subr.bf16.mxu1 %v1358_v4  ;;  %v391_v9 = vld [vmem:[#allocation9 + $0x20] sm:$0xff]  ;;  %v392_v10 = vld [vmem:[#allocation9 + $0x28] sm:$0xff]  ;;  %vm473_vm1 = vcmask 195584   ;;  %s1361_s18 = smov [#allocation13]   ;;  %p1778_p11 = scmp.eq.s32.totalorder %s1429_s11, 7 }
  0xab   : > { %911 = vmatprep.mubr.msk.f32.mxu1 %vm1359_vm0, %v1360_v7  ;;  %902 = vmatprep.mubr.msk.f32.mxu0 %vm1359_vm0, %v1360_v7  ;;  %v953_v8 = vpack.c.bf16 %v390_v6, %v389_v3  ;;  %v384_v11 = vld [vmem:[#allocation8] sm:$0xff]  ;;  %v385_v12 = vld [vmem:[#allocation8 + $0x8] sm:$0xff]  ;;  %v956_v14 = vpack.c.bf16 %v392_v10, %v391_v9  ;;  %v555_v15 = vld [vmem:[#allocation11] sm:$0xff]  ;;  %s687_s26 = sshll.u32 %s1361_s18, 4  ;;  %s688_s26 = int_to_ptr.vmem [resolvable:$true] %s687_s26 }
  0xac   : > { %951 = vmatpush3.bf16.msra.mxu0 %v950_v5  ;;  %v974_v13 = vpack.c.bf16 %v385_v12, %v384_v11  ;;  %v556_v16 = vld [vmem:[#allocation11 + $0x8] sm:$0xff]  ;;  %v393_v17 = vld [vmem:[#allocation9 + $0x30] sm:$0xff]  ;;  %v394_v18 = vld [vmem:[#allocation9 + $0x38] sm:$0xff]  ;;  %s1245_s9 = scalar_lea.vmem %s688_s26, 128  ;;  %p1252_p7 = scmp.lt.s32.totalorder %s688_s26, %s688_s26 }
  0xad   : > { %952 = vmatprep.subr.bf16.mxu0 %v1358_v4  ;;  %v386_v19 = vld [vmem:[#allocation8 + $0x10] sm:$0xff]  ;;  %v977_v21 = vpack.c.bf16 %v556_v16, %v555_v15  ;;  %v959_v22 = vpack.c.bf16 %v394_v18, %v393_v17  ;;  %v557_v23 = vld [vmem:[#allocation11 + $0x10] sm:$0xff]  ;;  %v395_v25 = vld [vmem:[#allocation9 + $0x40] sm:$0xff]  ;;  %p1246_p6 = scmp.ne.s32.totalorder %s688_s26, %s1245_s9  ;;  %p1253_p3 = scmp.lt.s32.totalorder %s1245_s9, %s1245_s9 }
  0xae   : > { %975 = vmatpush3.bf16.msra.mxu1 %v974_v13  ;;  %v382_v20 = vld [vmem:[%s1632_s17] sm:$0xff]  ;;  %v396_v26 = vld [vmem:[#allocation9 + $0x48] sm:$0xff]  ;;  %v559_v29 = vld [vmem:[#allocation11 + $0x20] sm:$0xff] }
  0xaf   : > { %909 = vmatprep.subr.mxu1 %v1360_v7  ;;  %v558_v24 = vld [vmem:[#allocation11 + $0x18] sm:$0xff]  ;;  %v962_v28 = vpack.c.bf16 %v396_v26, %v395_v25  ;;  %v560_v30 = vld [vmem:[#allocation11 + $0x28] sm:$0xff]  ;;  %v397_v31 = vld [vmem:[#allocation9 + $0x50] sm:$0xff]  ;;  %p1247_p12 = pnand %p1246_p6, %p1778_p11  ;;  %p1254_p1 = por %p1253_p3, %p1252_p7 }
  0xb0   : > { %954 = vmatpush3.bf16.msra.mxu0 %v953_v8  ;;  %v980_v27 = vpack.c.bf16 %v558_v24, %v557_v23  ;;  %v398_v32 = vld [vmem:[#allocation9 + $0x58] sm:$0xff]  ;;  %v983_v33 = vpack.c.bf16 %v560_v30, %v559_v29  ;;  %v561_v35 = vld [vmem:[#allocation11 + $0x30] sm:$0xff]  ;;  %v399_v37 = vld [vmem:[#allocation9 + $0x60] sm:$0xff] }
  0xb1   : > { %955 = vmatprep.subr.bf16.mxu0 %v1358_v4  ;;  %v965_v34 = vpack.c.bf16 %v398_v32, %v397_v31  ;;  %v562_v36 = vld [vmem:[#allocation11 + $0x38] sm:$0xff]  ;;  %v400_v38 = vld [vmem:[#allocation9 + $0x68] sm:$0xff]  ;;  %v563_v41 = vld [vmem:[#allocation11 + $0x40] sm:$0xff]  ;;  %p1248_p5 = pneg %p1247_p12 }
  0xb2   : > { %910 = vmatpush3.msra.mxu1 %v386_v19  ;;  %v986_v39 = vpack.c.bf16 %v562_v36, %v561_v35  ;;  %v968_v40 = vpack.c.bf16 %v400_v38, %v399_v37  ;;  %v564_v42 = vld [vmem:[#allocation11 + $0x48] sm:$0xff]  ;;  %v401_v43 = vld [vmem:[#allocation9 + $0x70] sm:$0xff]  ;;  %v402_v44 = vld [vmem:[#allocation9 + $0x78] sm:$0xff] }
  0xb3   : > { %912 = vmatmul.mubr.msk.f32.vlgmr.msra.gmra.mrb[0].mxu1 %vm473_vm1, %v382_v20  ;;  %976 = vmatprep.subr.bf16.mxu1 %v1358_v4  ;;  %v989_v45 = vpack.c.bf16 %v564_v42, %v563_v41  ;;  %v971_v46 = vpack.c.bf16 %v402_v44, %v401_v43  ;;  %v565_v47 = vld [vmem:[#allocation11 + $0x50] sm:$0xff]  ;;  %v566_v48 = vld [vmem:[#allocation11 + $0x58] sm:$0xff]  ;;  %v383_v50 = vld [vmem:[#allocation2] sm:$0xff]  ;;  %p1255_p4 = pnand %p1254_p1, %p1248_p5 }
  0xb4   : > { %957 = vmatpush3.bf16.msra.mxu0 %v956_v14  ;;  %978 = vmatpush3.bf16.msra.mxu1 %v977_v21  ;;  %v992_v49 = vpack.c.bf16 %v566_v48, %v565_v47  ;;  %v567_v51 = vld [vmem:[#allocation11 + $0x60] sm:$0xff]  ;;  %v568_v52 = vld [vmem:[#allocation11 + $0x68] sm:$0xff]  ;;  %v569_v54 = vld [vmem:[#allocation11 + $0x70] sm:$0xff] }
  0xb5   : > { %958 = vmatprep.subr.bf16.mxu0 %v1358_v4  ;;  %946 = vmatprep.mubr.msk.f32.mxu1 %vm1359_vm0, %v1360_v7  ;;  %v995_v53 = vpack.c.bf16 %v568_v52, %v567_v51  ;;  %v570_v55 = vld [vmem:[#allocation11 + $0x78] sm:$0xff]  ;;  %v824_v60 = vld [vmem:[%s1752_s4] ss:$0 sm:$0xff] }
  0xb6   : > { %979 = vmatprep.subr.bf16.mxu1 %v1358_v4  ;;  %v998_v56 = vpack.c.bf16 %v570_v55, %v569_v54  ;;  %v825_v0 = vld [vmem:[%s1754_s6] ss:$0 sm:$0xff] }
  0xb8   : > { %960 = vmatpush3.bf16.msra.mxu0 %v959_v22  ;;  %981 = vmatpush3.bf16.msra.mxu1 %v980_v27 }
  0xb9   : > { %961 = vmatprep.subr.bf16.mxu0 %v1358_v4  ;;  %982 = vmatprep.subr.bf16.mxu1 %v1358_v4 }
  0xbc   : > { %963 = vmatpush3.bf16.msra.mxu0 %v962_v28  ;;  %984 = vmatpush3.bf16.msra.mxu1 %v983_v33 }
  0xbd   : > { %964 = vmatprep.subr.bf16.mxu0 %v1358_v4  ;;  %985 = vmatprep.subr.bf16.mxu1 %v1358_v4 }
  0xc0   : > { %966 = vmatpush3.bf16.msra.mxu0 %v965_v34  ;;  %987 = vmatpush3.bf16.msra.mxu1 %v986_v39 }
  0xc1   : > { %967 = vmatprep.subr.bf16.mxu0 %v1358_v4  ;;  %988 = vmatprep.subr.bf16.mxu1 %v1358_v4 }
  0xc4   : > { %969 = vmatpush3.bf16.msra.mxu0 %v968_v40  ;;  %990 = vmatpush3.bf16.msra.mxu1 %v989_v45 }
  0xc5   : > { %970 = vmatprep.subr.bf16.mxu0 %v1358_v4  ;;  %991 = vmatprep.subr.bf16.mxu1 %v1358_v4 }
  0xc8   : > { %972 = vmatpush3.bf16.msra.mxu0 %v971_v46  ;;  %993 = vmatpush3.bf16.msra.mxu1 %v992_v49 }
  0xc9   : > { %994 = vmatprep.subr.bf16.mxu1 %v1358_v4 }
  0xcb   : > { %903 = vmatmul.mubr.f32.vlgmr.msra.gmra.mrb[0].mxu0 %v383_v50 }
  0xcc   : > { %996 = vmatpush3.bf16.msra.mxu1 %v995_v53 }
  0xcd   : > { %997 = vmatprep.subr.bf16.mxu1 %v1358_v4 }
  0xd0   : > { %999 = vmatpush3.bf16.msra.mxu1 %v998_v56 }
 0x186   : > { %v543_v57 = vpop.f32.mrb[0].mxu1 }
 0x187   : > { %v913_v58 = vpop.f32.mrb[1].mxu1 }
 0x19e   : > { %v469_v59 = vpop.f32.mrb[0].mxu0 }
 0x19f   : > { %v544_v61 = vadd.f32 %v543_v57, %v469_v59  ;;  %v904_v62 = vpop.f32.mrb[1].mxu0 }
 0x1a1   : > { %v554_v63 = vadd.f32 %v824_v60, %v544_v61 }
 0x1a3   : > { %660 = vst [vmem:[#allocation2] sm:$0xff] %v554_v63  ;;  %661 = vst [vmem:[#allocation13] sm:$0xff] %v554_v63  ;;  %947 = vmatmul.mubr.f32.vlgmr.msra.gmra.mrb[2].mxu1 %v554_v63 }
 0x276   : > { %v644_v1 = vpop.f32.mrb[2].mxu1 }
 0x277   : > { %v645_v2 = vadd.f32 %v825_v0, %v644_v1  ;;  %v948_v3 = vpop.f32.mrb[3].mxu1 }
 0x279   : > { %648 = vmax.xlane.f32.xlu0 %v645_v2 }
 0x306   : > { %v649_v4 = vpop.xlane.xlu0 %648 }
 0x307   : > { %v650_v5 = vsub.f32 %v645_v2, %v649_v4 }
 0x309   : > { %v651_v6 = vmul.f32 1.442695, %v650_v5 }
 0x30b   : > { %1099 = vpow2.f32 %v651_v6 }
 0x315   : > { %v1100_v7 = vpop.eup %1099 }
 0x316   : > { %653 = vadd.xlane.f32.xlu0 %v1100_v7 }
 0x317   : > { %1258 = shalt.err (!%p1255_p4)
}
 0x318   : > { %s1259_s14 = scalar_lea.hbm %s1756_s8, 128  ;;  %p1779_p13 = pmov %p1778_p11 }
 0x319   : > { %p1260_p10 = scmp.ne.s32.totalorder %s1756_s8, %s1259_s14  ;;  %p1265_p8 = scmp.lt.u32.totalorder %s1259_s14, %s1756_s8 }
 0x31b   : > { %p1261_p0 = pnand %p1260_p10, %p1779_p13 }
 0x31d   : > { %p1262_p2 = pneg %p1261_p0 }
 0x31f   : > { %p1267_p9 = pnand %p1265_p8, %p1262_p2 }
 0x321   : > { %1270 = shalt.err (!%p1267_p9)
}
 0x322   : > { %p1780_p6 = pmov %p1778_p11  ;;  %s827_s18 = sshll.u32 %s1429_s11, 7 }
 0x323   : > { %s676_s9 = sshll.u32 %s1646_s12, 4  ;;  %s1700_s14 = scalar_lea.hbm %s1755_s7, %s827_s18  ;;  %s1702_s9 = int_to_ptr.vmem [resolvable:$true] %s676_s9 }
 0x324   : > { %1020 = dma.vmem_to_hbm [thread:$0]  (%p1780_p6), %s688_s26, 128, %s1756_s8, [#allocation14]  }
 0x325   : > { %s663_s26 = scalar_lea.sflag [#allocation5], %s1628_s1  ;;  %s1271_s20 = scalar_lea.vmem %s1702_s9, 128 }
 0x326   : > { %p1272_p11 = scmp.ne.s32.totalorder %s1702_s9, %s1271_s20  ;;  %p1781_p12 = scmp.ne.s32.totalorder %s1769_s16, 0 }
 0x327   : > { %s1362_s17 = smov [#allocation12]  }
 0x328   : > { %p1273_p5 = pnand %p1272_p11, %p1781_p12  ;;  %s1275_s25 = sshll.u32 %s1362_s17, 4  ;;  %s1276_s25 = int_to_ptr.vmem [resolvable:$false] %s1275_s25 }
 0x329   : > { %s1277_s10 = scalar_lea.vmem %s1276_s25, 256  ;;  %p1278_p3 = scmp.lt.s32.totalorder %s1702_s9, %s1276_s25 }
 0x32a   : > { %p1274_p7 = pneg %p1273_p5  ;;  %p1279_p1 = scmp.lt.s32.totalorder %s1277_s10, %s1271_s20 }
 0x32c   : > { %p1280_p4 = por %p1279_p1, %p1278_p3 }
 0x32e   : > { %p1281_p10 = pnand %p1280_p4, %p1274_p7 }
 0x3a3   : > { %v654_v8 = vpop.xlane.xlu0 %653 }
 0x3a4   : > { %1101 = vlog2.f32 %v654_v8 }
 0x3ae   : > { %v1102_v9 = vpop.eup %1101 }
 0x3af   : > { %v656_v10 = vmul.f32 0.6931472, %v1102_v9 }
 0x3b1   : > { %v657_v11 = vadd.f32 %v656_v10, %v649_v4 }
 0x3b3   : > { %v658_v12 = vsub.f32 %v645_v2, %v657_v11 }
 0x3b5   : > { %659 = vst [vmem:[%s1646_s12] sm:$0xff] %v658_v12 }
 0x3b6   : > { %1284 = shalt.err (!%p1281_p10)
}
 0x3b7   : > { %s1285_s1 = scalar_lea.hbm %s1700_s14, 128  ;;  %s1289_s13 = scalar_lea.hbm %s1755_s7, 1024 }
 0x3b8   : > { %p1286_p13 = scmp.ne.s32.totalorder %s1700_s14, %s1285_s1  ;;  %p1290_p8 = scmp.lt.u32.totalorder %s1700_s14, %s1755_s7 }
 0x3b9   : > { %p1291_p9 = scmp.lt.u32.totalorder %s1289_s13, %s1285_s1  ;;  %p1293_p11 = scmp.lt.u32.totalorder %s1285_s1, %s1700_s14 }
 0x3ba   : > { %p1287_p0 = pnand %p1286_p13, %p1781_p12 }
 0x3bb   : > { %p1292_p6 = por %p1291_p9, %p1290_p8 }
 0x3bc   : > { %p1288_p2 = pneg %p1287_p0 }
 0x3bd   : > { %p1294_p5 = por %p1293_p11, %p1292_p6 }
 0x3bf   : > { %p1295_p7 = pnand %p1294_p5, %p1288_p2 }
 0x3c1   : > { %1298 = shalt.err (!%p1295_p7)
}
 0x3c2   : > { %1018 = dma.vmem_to_hbm [thread:$0]  (%p1781_p12), %s1702_s9, 128, %s1700_s14, %s663_s26  }
 0x3c3   : > { %p1782_p3 = scmp.eq.s32.totalorder %s1429_s11, 7 }
 0x3c5   : > { %1328 = dma.done.wait (%p1782_p3), [#allocation14], 128   ;;  %p1783_p1 = pmov %p1782_p3 }
 0x3c7   : > { %1330 = vsyncadd (%p1783_p1), [#allocation14], 4294967168 }
 0x3c8 PF: > { %p1056_p4 = scmp.ge.s32.totalorder %s1349_s30, 2  ;;  %s703_s24 = sand.u32 1, %s1337_s27  }
 0x3c9   : > { %p1784_p10 = scmp.ne.s32.totalorder %s1770_s21, 0  ;;  %s704_s20 = scalar_lea.sflag [#allocation5], %s703_s24 }
 0x3cb   : > { %p1042_p13 = pnand %p1056_p4, %p1784_p10 }
 0x3cd   : > { %1332 = dma.done.wait (!%p1042_p13), %s704_s20, 128  }
 0x3ce   : > { %1334 = vsyncadd (!%p1042_p13), %s704_s20, 4294967168  ;;  %p25_p12 = scmp.ge.s32.totalorder %s1550_s23, 10   ;;  %s1785_s27 = smov %s1341_s28 }
 0x3cf   : > { %s1786_s28 = smov %s1345_s29  ;;  %s1787_s29 = smov %s1561_s19 }
 0x3d0   : > { %s1788_s30 = smov %s1550_s23  ;;  %27 = sbr.rel (!%p25_p12) target bundleno = 10 (0xa), region = 121 }
 0x3d7   :  { %709 = vsyncpa [#allocation4], 1 }
 0x3d8   :  { %711 = vsyncpa [#allocation4 + $0x1], 1 }
 0x3d9   :  { %712 = vsyncpa [#allocation7], 1 }
 0x3da   :  { %713 = vsyncpa [#allocation10], 1 }
 0x3db   :  { %714 = vsyncpa [#allocation5], 1 }
 0x3dc   :  { %716 = vsyncpa [#allocation5 + $0x1], 1 }
 0x3dd   :  { %717 = vsyncpa [#allocation14], 1 }

</bundles_post_ra>
